<compile_context>
chip_gen: v7x
topology: tpu7x:2x2x1
jax: 0.10.0
libtpu: 0.0.40
codegen_flags: <defaults>
</compile_context>

<pallas_src>
import jax
import jax.numpy as jnp
from jax.experimental import pallas as pl
from jax.experimental.pallas import tpu as pltpu


def _round_up(x, m):
    return (x + m - 1) // m * m


def _mlp_kernel(x_ref, w1_ref, w2_ref, w3_ref, b_ref, o_ref):
    """Fused 3-layer MLP: (x @ W1 + b1).relu @ W2 + b2).relu @ W3 + b3."""
    h1 = w1_ref.shape[1]
    h2 = w2_ref.shape[1]
    e = w3_ref.shape[1]

    # Layer 1: single K=(state_dim+goal_dim) MXU dot, f32 accumulation.
    h = jnp.dot(x_ref[...], w1_ref[...], preferred_element_type=jnp.float32)
    h = jnp.maximum(h + b_ref[0:1, :h1], 0.0)

    # Layer 2.
    h = jnp.dot(h.astype(w2_ref.dtype), w2_ref[...],
                preferred_element_type=jnp.float32)
    h = jnp.maximum(h + b_ref[1:2, :h2], 0.0)

    # Layer 3 (no activation).  Output last dim == embed_dim (no lane padding).
    o = jnp.dot(h.astype(w3_ref.dtype), w3_ref[...],
                preferred_element_type=jnp.float32)
    o_ref[...] = (o + b_ref[2:3, :e]).astype(o_ref.dtype)


def prepare_state_goal_encoder_params(params, compute_dtype=jnp.bfloat16):
    """One-time packing of State_Goal_Encoder parameters for the kernel.

    params: w1 [state_dim+goal_dim, H1], b1 [H1], w2 [H1, H2], b2 [H2],
            w3 [H2, E], b3 [E]  (weights stored as [in, out], i.e. the
            transpose of the PyTorch nn.Linear layout — numerically identical).
    compute_dtype: dtype fed to the MXU (bf16 default; use jnp.float32 for
                   exact parity with the f32 PyTorch module).

    Call this ONCE (e.g. at model load); the forward pass then does no weight
    casting / packing per call.
    """
    w1, b1 = params["w1"], params["b1"]
    w2, b2 = params["w2"], params["b2"]
    w3, b3 = params["w3"], params["b3"]
    h1, h2, e = w1.shape[1], w2.shape[1], w3.shape[1]
    assert w2.shape[0] == h1 and w3.shape[0] == h2

    # Pack the three biases (kept f32 for the f32 epilogue) into one array so
    # the kernel has a single small bias input stream.
    w = max(h1, h2, e)
    bpack = jnp.zeros((3, w), jnp.float32)
    bpack = bpack.at[0, :h1].set(b1.reshape(-1).astype(jnp.float32))
    bpack = bpack.at[1, :h2].set(b2.reshape(-1).astype(jnp.float32))
    bpack = bpack.at[2, :e].set(b3.reshape(-1).astype(jnp.float32))

    return {
        "w1": w1.astype(compute_dtype),
        "w2": w2.astype(compute_dtype),
        "w3": w3.astype(compute_dtype),
        "bpack": bpack,
        "compute_dtype": compute_dtype,
    }


def state_goal_encoder_forward(state, goal, packed, *, batch_tile=512):
    """Fused forward pass of State_Goal_Encoder.

    state: [B, state_dim], goal: [B, goal_dim].
    packed: output of prepare_state_goal_encoder_params().
    batch_tile: batch rows per grid step when B is large (>= 2*batch_tile).
                512 keeps the MXU M-dim saturated on v6e/v7x; on v5e (single
                TensorCore) anything >= 256 is equivalent — the grid only
                matters for step-overhead amortization there.
    """
    w1, w2, w3, bpack = packed["w1"], packed["w2"], packed["w3"], packed["bpack"]
    cd = packed["compute_dtype"]

    B, ds = state.shape
    bg, dg = goal.shape
    assert bg == B, "state and goal must share the batch dimension"
    din, h1 = w1.shape
    h2 = w2.shape[1]
    e = w3.shape[1]
    w = bpack.shape[1]
    assert din == ds + dg

    # Concat state||goal (tiny B x din copy) and cast once in the wrapper so
    # the kernel sees a single half-width (bf16) activation stream.
    x = jnp.concatenate([state, goal], axis=-1).astype(cd)

    # Batch tiling: one grid step for small/medium batches (pad B to a multiple
    # of 8); tile only when B >= 2*batch_tile so that, with the "parallel"
    # semantics, each v7x TensorCore gets >= batch_tile rows of real work.
    if B < 2 * batch_tile:
        tb = _round_up(max(B, 8), 8)
        b_pad = tb
    else:
        tb = batch_tile
        b_pad = _round_up(B, tb)
    if b_pad != B:
        x = jnp.pad(x, ((0, b_pad - B), (0, 0)))
    grid = (b_pad // tb,)

    inv = lambda shape: pl.BlockSpec(shape, lambda i: (0, 0))  # grid-invariant

    itemsize = jnp.dtype(cd).itemsize
    cost = pl.CostEstimate(
        flops=2 * b_pad * (din * h1 + h1 * h2 + h2 * e),
        transcendentals=0,
        bytes_accessed=(b_pad * din * itemsize                      # x
                        + (din * h1 + h1 * h2 + h2 * e) * itemsize  # weights
                        + 3 * w * 4                                 # biases
                        + b_pad * e * 4),                           # output
    )

    out = pl.pallas_call(
        _mlp_kernel,
        out_shape=jax.ShapeDtypeStruct((b_pad, e), jnp.float32),
        grid=grid,
        in_specs=[
            pl.BlockSpec((tb, din), lambda i: (i, 0)),  # activations tile
            inv((din, h1)),                             # W1
            inv((h1, h2)),                              # W2
            inv((h2, e)),                               # W3
            inv((3, w)),                                # packed biases (f32)
        ],
        out_specs=pl.BlockSpec((tb, e), lambda i: (i, 0)),
        compiler_params=pltpu.CompilerParams(
            dimension_semantics=("parallel",)),
        cost_estimate=cost,
    )(x, w1, w2, w3, bpack)

    return out[:B] if b_pad != B else out


def init_state_goal_encoder_params(key, state_dim, goal_dim, embed_dim,
                                   hidden_units=(256, 256)):
    """Deterministic init mirroring nn.Linear (weights kept as [in, out])."""
    dims = [state_dim + goal_dim, *hidden_units, embed_dim]
    params = {}
    for idx, (i_dim, o_dim) in enumerate(zip(dims[:-1], dims[1:]), start=1):
        key, kw, kb = jax.random.split(key, 3)
        bound = 1.0 / float(i_dim) ** 0.5  # PyTorch nn.Linear default range
        params[f"w{idx}"] = jax.random.uniform(
            kw, (i_dim, o_dim), jnp.float32, -bound, bound)
        params[f"b{idx}"] = jax.random.uniform(
            kb, (o_dim,), jnp.float32, -bound, bound)
    return params


def _reference_forward(state, goal, params, compute_dtype=jnp.bfloat16):
    """Plain-JAX reference matching the kernel's numerics (cd inputs, f32 acc)."""
    cd = compute_dtype
    x = jnp.concatenate([state, goal], axis=-1).astype(cd)
    h = jnp.dot(x, params["w1"].astype(cd),
                preferred_element_type=jnp.float32) + params["b1"]
    h = jnp.maximum(h, 0.0)
    h = jnp.dot(h.astype(cd), params["w2"].astype(cd),
                preferred_element_type=jnp.float32) + params["b2"]
    h = jnp.maximum(h, 0.0)
    return jnp.dot(h.astype(cd), params["w3"].astype(cd),
                   preferred_element_type=jnp.float32) + params["b3"]


if __name__ == "__main__":
    key = jax.random.PRNGKey(0)
    batch, state_dim, goal_dim, embed_dim = 64, 11, 5, 32
    hidden_units = (256, 256)  # module default

    key, ks, kg = jax.random.split(key, 3)
    state = jax.random.normal(ks, (batch, state_dim), jnp.float32)
    goal = jax.random.normal(kg, (batch, goal_dim), jnp.float32)
    params = init_state_goal_encoder_params(
        key, state_dim, goal_dim, embed_dim, hidden_units)

    # One-time parameter packing (hoisted out of the forward pass).
    packed = prepare_state_goal_encoder_params(params)

    out = state_goal_encoder_forward(state, goal, packed)
    out = jax.block_until_ready(out)

    ref = _reference_forward(state, goal, params,
                             compute_dtype=packed["compute_dtype"])
    assert out.shape == (batch, embed_dim)
    assert jnp.allclose(out, ref, atol=1e-2, rtol=1e-2), "mismatch vs reference"
    print("KERNEL_OK")
</pallas_src>

<mosaic_0001>
module attributes {stable_mosaic.version = 11 : i64} {
  func.func @_mlp_kernel(%arg0: i32, %arg1: memref<64x16xbf16, #tpu.memory_space<vmem>>, %arg2: memref<16x256xbf16, #tpu.memory_space<vmem>>, %arg3: memref<256x256xbf16, #tpu.memory_space<vmem>>, %arg4: memref<256x32xbf16, #tpu.memory_space<vmem>>, %arg5: memref<3x256xf32, #tpu.memory_space<vmem>>, %arg6: memref<64x32xf32, #tpu.memory_space<vmem>>) attributes {dimension_semantics = [#tpu.dimension_semantics<parallel>], iteration_bounds = array<i64: 1>, scalar_prefetch = 0 : i64, scratch_operands = 0 : i64, tpu.core_type = #tpu.core_type<tc>, window_params = [{transform_indices = @transform_0, window_bounds = array<i64: 64, 16>}, {pipeline_mode = #tpu.pipeline_mode<synchronous>, transform_indices = @transform_1, window_bounds = array<i64: 16, 256>}, {pipeline_mode = #tpu.pipeline_mode<synchronous>, transform_indices = @transform_2, window_bounds = array<i64: 256, 256>}, {pipeline_mode = #tpu.pipeline_mode<synchronous>, transform_indices = @transform_3, window_bounds = array<i64: 256, 32>}, {pipeline_mode = #tpu.pipeline_mode<synchronous>, transform_indices = @transform_4, window_bounds = array<i64: 3, 256>}, {transform_indices = @transform_5, window_bounds = array<i64: 64, 32>}]} {
    %c0 = arith.constant 0 : index
    %c0_0 = arith.constant 0 : index
    %0 = vector.load %arg1[%c0, %c0_0] : memref<64x16xbf16, #tpu.memory_space<vmem>>, vector<64x16xbf16>
    %c0_1 = arith.constant 0 : index
    %c0_2 = arith.constant 0 : index
    %1 = vector.load %arg2[%c0_1, %c0_2] : memref<16x256xbf16, #tpu.memory_space<vmem>>, vector<16x256xbf16>
    %cst = arith.constant dense<0.000000e+00> : vector<64x256xf32>
    %2 = tpu.matmul %0, %1, %cst {dimension_numbers = #tpu.dot_dimension_numbers<[1], [0], [0], [1], [0, 0, 1, 1], [], []>} : vector<64x16xbf16>, vector<16x256xbf16>, vector<64x256xf32> -> vector<64x256xf32>
    %c0_3 = arith.constant 0 : index
    %c0_4 = arith.constant 0 : index
    %3 = vector.load %arg5[%c0_3, %c0_4] : memref<3x256xf32, #tpu.memory_space<vmem>>, vector<1x256xf32>
    %4 = vector.broadcast %3 : vector<1x256xf32> to vector<64x256xf32>
    %5 = arith.addf %2, %4 : vector<64x256xf32>
    %cst_5 = arith.constant 0.000000e+00 : f32
    %6 = vector.broadcast %cst_5 : f32 to vector<64x256xf32>
    %7 = arith.maximumf %5, %6 : vector<64x256xf32>
    %8 = arith.truncf %7 : vector<64x256xf32> to vector<64x256xbf16>
    %c0_6 = arith.constant 0 : index
    %c0_7 = arith.constant 0 : index
    %9 = vector.load %arg3[%c0_6, %c0_7] : memref<256x256xbf16, #tpu.memory_space<vmem>>, vector<256x256xbf16>
    %cst_8 = arith.constant dense<0.000000e+00> : vector<64x256xf32>
    %10 = tpu.matmul %8, %9, %cst_8 {dimension_numbers = #tpu.dot_dimension_numbers<[1], [0], [0], [1], [0, 0, 1, 1], [], []>} : vector<64x256xbf16>, vector<256x256xbf16>, vector<64x256xf32> -> vector<64x256xf32>
    %c1 = arith.constant 1 : index
    %c0_9 = arith.constant 0 : index
    %11 = vector.load %arg5[%c1, %c0_9] : memref<3x256xf32, #tpu.memory_space<vmem>>, vector<1x256xf32>
    %12 = vector.broadcast %11 : vector<1x256xf32> to vector<64x256xf32>
    %13 = arith.addf %10, %12 : vector<64x256xf32>
    %cst_10 = arith.constant 0.000000e+00 : f32
    %14 = vector.broadcast %cst_10 : f32 to vector<64x256xf32>
    %15 = arith.maximumf %13, %14 : vector<64x256xf32>
    %16 = arith.truncf %15 : vector<64x256xf32> to vector<64x256xbf16>
    %c0_11 = arith.constant 0 : index
    %c0_12 = arith.constant 0 : index
    %17 = vector.load %arg4[%c0_11, %c0_12] : memref<256x32xbf16, #tpu.memory_space<vmem>>, vector<256x32xbf16>
    %cst_13 = arith.constant dense<0.000000e+00> : vector<64x32xf32>
    %18 = tpu.matmul %16, %17, %cst_13 {dimension_numbers = #tpu.dot_dimension_numbers<[1], [0], [0], [1], [0, 0, 1, 1], [], []>} : vector<64x256xbf16>, vector<256x32xbf16>, vector<64x32xf32> -> vector<64x32xf32>
    %c2 = arith.constant 2 : index
    %c0_14 = arith.constant 0 : index
    %19 = vector.load %arg5[%c2, %c0_14] : memref<3x256xf32, #tpu.memory_space<vmem>>, vector<1x32xf32>
    %20 = vector.broadcast %19 : vector<1x32xf32> to vector<64x32xf32>
    %21 = arith.addf %18, %20 : vector<64x32xf32>
    %c0_15 = arith.constant 0 : index
    %c0_16 = arith.constant 0 : index
    %22 = vector.load %arg6[%c0_15, %c0_16] : memref<64x32xf32, #tpu.memory_space<vmem>>, vector<64x32xf32>
    tpu.vector_store %arg6[%c0_15, %c0_16], %21 {strides = array<i32>} : memref<64x32xf32, #tpu.memory_space<vmem>>, vector<64x32xf32>,
    return
  }
  func.func @transform_0(%arg0: i32) -> (i32, i32) {
    %c0_i32 = arith.constant 0 : i32
    %c0_i32_0 = arith.constant 0 : i32
    return %arg0, %c0_i32 : i32, i32
  }
  func.func @transform_1(%arg0: i32) -> (i32, i32) {
    %c0_i32 = arith.constant 0 : i32
    %c0_i32_0 = arith.constant 0 : i32
    %c0_i32_1 = arith.constant 0 : i32
    return %c0_i32, %c0_i32_0 : i32, i32
  }
  func.func @transform_2(%arg0: i32) -> (i32, i32) {
    %c0_i32 = arith.constant 0 : i32
    %c0_i32_0 = arith.constant 0 : i32
    %c0_i32_1 = arith.constant 0 : i32
    return %c0_i32, %c0_i32_0 : i32, i32
  }
  func.func @transform_3(%arg0: i32) -> (i32, i32) {
    %c0_i32 = arith.constant 0 : i32
    %c0_i32_0 = arith.constant 0 : i32
    %c0_i32_1 = arith.constant 0 : i32
    return %c0_i32, %c0_i32_0 : i32, i32
  }
  func.func @transform_4(%arg0: i32) -> (i32, i32) {
    %c0_i32 = arith.constant 0 : i32
    %c0_i32_0 = arith.constant 0 : i32
    %c0_i32_1 = arith.constant 0 : i32
    return %c0_i32, %c0_i32_0 : i32, i32
  }
  func.func @transform_5(%arg0: i32) -> (i32, i32) {
    %c0_i32 = arith.constant 0 : i32
    %c0_i32_0 = arith.constant 0 : i32
    return %arg0, %c0_i32 : i32, i32
  }
}

</mosaic_0001>

<bundles_post_ra>
// kernel: tpu_custom_call.1
= control target key start
LH: loop header
LB: loop body
LE: loop exit
PB: predicated region body
PF: predicated region fallthrough
CT: control target
= control target key end

     0   :  { %10 = vsyncpa [#allocation3], 0  ;;  %s910_s18 = smov [#allocation2]   ;;  %s1079_s0 = inlined_call_operand.vmem [shape: bf16[64,16], index: 0, kind: input, shape index: {}]   ;;  %s1080_s1 = inlined_call_operand.vmem [shape: bf16[16,256], index: 1, kind: input, shape index: {}]   ;;  %s1081_s2 = inlined_call_operand.hbm [shape: bf16[256,256], index: 2, kind: input, shape index: {}]   ;;  %s1082_s3 = inlined_call_operand.vmem [shape: bf16[256,32], index: 3, kind: input, shape index: {}]   ;;  %s1083_s4 = inlined_call_operand.vmem [shape: f32[3,256], index: 4, kind: input, shape index: {}]   ;;  %s1084_s5 = inlined_call_operand.vmem [shape: f32[64,32], index: 5, kind: output, shape index: {}]  }
   0x1   :  { %s20_s19 = sshll.u32 %s910_s18, 4  ;;  %s886_s22 = scalar_lea.hbm %s1081_s2, 4096  ;;  %s21_s19 = int_to_ptr.vmem [resolvable:$true] %s20_s19 }
   0x2   :  { %p887_p0 = scmp.ne.s32.totalorder %s1081_s2, %s886_s22  ;;  %p890_p1 = scmp.lt.u32.totalorder %s886_s22, %s1081_s2 }
   0x4   :  { %p892_p2 = pnand %p890_p1, %p887_p0 }
   0x6   :  { %895 = shalt.err (!%p892_p2)
}
   0x7   :  { %s896_s27 = scalar_lea.vmem %s21_s19, 4096  ;;  %p901_p4 = scmp.lt.s32.totalorder %s21_s19, %s21_s19 }
   0x8   :  { %p897_p3 = scmp.ne.s32.totalorder %s21_s19, %s896_s27  ;;  %p902_p5 = scmp.lt.s32.totalorder %s896_s27, %s896_s27 }
   0xa   :  { %p903_p6 = por %p902_p5, %p901_p4 }
   0xc   :  { %p904_p7 = pnand %p903_p6, %p897_p3 }
   0xe   :  { %907 = shalt.err (!%p904_p7)
}
   0xf   :  { %s911_s28 = smov 128   ;;  %s912_s29 = smov 8  }
  0x10   :  { %26 = dma.hbm_to_vmem [thread:$0]  %s1081_s2, 4096, %s21_s19, [#allocation3], %s911_s28, %s911_s28, %s912_s29  }
  0x11   :  { %908 = dma.done.wait [#allocation3], 4096  }
  0x12   :  { %909 = vsyncadd [#allocation3], 4294963200  ;;  %v913_v0 = vmov 0   ;;  %v815_v1 = vld [vmem:[%s1080_s1 + $0x4] ss:$8 sps:$4 sm:$0xff]   ;;  %vm87_vm0 = vcmask 130048   ;;  %v47_v51 = vlaneseq }
  0x13   :  { %132 = vmatprep.mubr.bf16.mxu0 %v913_v0  ;;  %v817_v2 = vld [vmem:[%s1080_s1] ss:$8 sps:$4 sm:$0xff]   ;;  %100 = vmatprep.subr.bf16.mxu0 %v815_v1  ;;  %v822_v4 = vld [vmem:[#allocation2 + $0x4] ss:$8 sps:$4 sm:$0xff]   ;;  %v825_v6 = vld [vmem:[#allocation2 + $0x14] ss:$8 sps:$4 sm:$0xff]  }
  0x14   :  { %v818_v3 = vld [vmem:[%s1079_s0] sm:$0xff]   ;;  %101 = vmatpush1.bf16.msra.mxu0 %v817_v2  ;;  %402 = vmatprep.subr.bf16.mxu1 %v822_v4  ;;  %v827_v7 = vld [vmem:[#allocation2 + $0x10] ss:$8 sps:$4 sm:$0xff]   ;;  %v819_v8 = vld [vmem:[%s1079_s0 + $0x8] sm:$0xff]   ;;  %v1014_v52 = vshrl.u32 %v47_v51, 7  ;;  %vm697_vm1 = vcmask 261120  }
  0x15   :  { %v824_v5 = vld [vmem:[#allocation2] ss:$8 sps:$4 sm:$0xff]   ;;  %v828_v9 = vld [vmem:[#allocation2 + $0x24] ss:$8 sps:$4 sm:$0xff]   ;;  %v831_v11 = vld [vmem:[#allocation2 + $0x34] ss:$8 sps:$4 sm:$0xff]  }
  0x16   :  { %403 = vmatpush1.bf16.msra.mxu1 %v824_v5  ;;  %v830_v10 = vld [vmem:[#allocation2 + $0x20] ss:$8 sps:$4 sm:$0xff]   ;;  %v833_v12 = vld [vmem:[#allocation2 + $0x30] ss:$8 sps:$4 sm:$0xff]   ;;  %v834_v14 = vld [vmem:[#allocation2 + $0x44] ss:$8 sps:$4 sm:$0xff]  }
  0x17   :  { %717 = vmatmul.mubr.msk.bf16.vlgmr.msra.gmra.mrb[0].mxu0 %vm87_vm0, %v818_v3  ;;  %404 = vmatprep.subr.bf16.mxu1 %v825_v6  ;;  %v820_v13 = vld [vmem:[%s1079_s0 + $0x10] sm:$0xff]   ;;  %v836_v15 = vld [vmem:[#allocation2 + $0x40] ss:$8 sps:$4 sm:$0xff]   ;;  %v821_v18 = vld [vmem:[%s1079_s0 + $0x18] sm:$0xff]   ;;  %v49_v53 = vsub.s32 0, %v1014_v52  ;;  %v53_v55 = vsub.s32 1, %v1014_v52 }
  0x18   :  { %142 = vmatprep.mubr.bf16.mxu0 %v913_v0  ;;  %v837_v16 = vld [vmem:[#allocation2 + $0x54] ss:$8 sps:$4 sm:$0xff]   ;;  %v839_v17 = vld [vmem:[#allocation2 + $0x50] ss:$8 sps:$4 sm:$0xff]   ;;  %v840_v19 = vld [vmem:[#allocation2 + $0x64] ss:$8 sps:$4 sm:$0xff]  }
  0x19   :  { %v842_v20 = vld [vmem:[#allocation2 + $0x60] ss:$8 sps:$4 sm:$0xff]   ;;  %v843_v21 = vld [vmem:[#allocation2 + $0x74] ss:$8 sps:$4 sm:$0xff]   ;;  %v845_v22 = vld [vmem:[#allocation2 + $0x70] ss:$8 sps:$4 sm:$0xff]  }
  0x1a   :  { %405 = vmatpush1.bf16.msra.mxu1 %v827_v7  ;;  %v846_v23 = vld [vmem:[#allocation2 + $0x84] ss:$8 sps:$4 sm:$0xff]   ;;  %v848_v24 = vld [vmem:[#allocation2 + $0x80] ss:$8 sps:$4 sm:$0xff]   ;;  %v849_v25 = vld [vmem:[#allocation2 + $0x94] ss:$8 sps:$4 sm:$0xff]  }
  0x1b   :  { %406 = vmatprep.subr.bf16.mxu1 %v828_v9  ;;  %v851_v26 = vld [vmem:[#allocation2 + $0x90] ss:$8 sps:$4 sm:$0xff]   ;;  %v852_v27 = vld [vmem:[#allocation2 + $0xa4] ss:$8 sps:$4 sm:$0xff]   ;;  %v854_v28 = vld [vmem:[#allocation2 + $0xa0] ss:$8 sps:$4 sm:$0xff]  }
  0x1c   :  { %v855_v29 = vld [vmem:[#allocation2 + $0xb4] ss:$8 sps:$4 sm:$0xff]   ;;  %v857_v30 = vld [vmem:[#allocation2 + $0xb0] ss:$8 sps:$4 sm:$0xff]   ;;  %v858_v31 = vld [vmem:[#allocation2 + $0xc4] ss:$8 sps:$4 sm:$0xff]  }
  0x1d   :  { %v860_v32 = vld [vmem:[#allocation2 + $0xc0] ss:$8 sps:$4 sm:$0xff]   ;;  %v861_v33 = vld [vmem:[#allocation2 + $0xd4] ss:$8 sps:$4 sm:$0xff]   ;;  %v863_v34 = vld [vmem:[#allocation2 + $0xd0] ss:$8 sps:$4 sm:$0xff]  }
  0x1e   :  { %407 = vmatpush1.bf16.msra.mxu1 %v830_v10  ;;  %v864_v35 = vld [vmem:[#allocation2 + $0xe4] ss:$8 sps:$4 sm:$0xff]   ;;  %v866_v36 = vld [vmem:[#allocation2 + $0xe0] ss:$8 sps:$4 sm:$0xff]   ;;  %v867_v37 = vld [vmem:[#allocation2 + $0xf4] ss:$8 sps:$4 sm:$0xff]  }
  0x1f   :  { %718 = vmatmul.mubr.msk.bf16.gmra.mrb[4].mxu0 %vm87_vm0, %v819_v8  ;;  %408 = vmatprep.subr.bf16.mxu1 %v831_v11  ;;  %v869_v38 = vld [vmem:[#allocation2 + $0xf0] ss:$8 sps:$4 sm:$0xff]   ;;  %v870_v39 = vld [vmem:[%s1082_s3 + $0x40] sm:$0xff]   ;;  %v872_v41 = vld [vmem:[%s1082_s3 + $0x48] sm:$0xff]  }
  0x20   :  { %152 = vmatprep.mubr.bf16.mxu0 %v913_v0  ;;  %v871_v40 = vld [vmem:[%s1082_s3] sm:$0xff]   ;;  %771 = vmatprep.subr.bf16.mxu0 %v870_v39  ;;  %v873_v42 = vld [vmem:[%s1082_s3 + $0x8] sm:$0xff]   ;;  %v874_v43 = vld [vmem:[%s1082_s3 + $0x50] sm:$0xff]  }
  0x21   :  { %772 = vmatpush3.bf16.msra.mxu0 %v871_v40  ;;  %v875_v44 = vld [vmem:[%s1082_s3 + $0x10] sm:$0xff]   ;;  %v876_v45 = vld [vmem:[%s1082_s3 + $0x58] sm:$0xff]   ;;  %v878_v47 = vld [vmem:[%s1082_s3 + $0x60] sm:$0xff]  }
  0x22   :  { %409 = vmatpush1.bf16.msra.mxu1 %v833_v12  ;;  %773 = vmatprep.subr.bf16.mxu0 %v872_v41  ;;  %v877_v46 = vld [vmem:[%s1082_s3 + $0x18] sm:$0xff]   ;;  %v879_v48 = vld [vmem:[%s1082_s3 + $0x20] sm:$0xff]   ;;  %v880_v49 = vld [vmem:[%s1082_s3 + $0x68] sm:$0xff]  }
  0x23   :  { %410 = vmatprep.subr.bf16.mxu1 %v834_v14  ;;  %v881_v50 = vld [vmem:[%s1082_s3 + $0x28] sm:$0xff]   ;;  %v45_v54 = vld [vmem:[%s1083_s4] ss:$4 sm:$0x3]  ;;  %v883_v51 = vld [vmem:[%s1082_s3 + $0x30] sm:$0xff]  }
  0x24   :  { %v50_v56 = vrot.slane %v45_v54, %v49_v53  ;;  %v54_v57 = vrot.slane %v45_v54, %v53_v55  ;;  %v884_v54 = vld [vmem:[%s1082_s3 + $0x78] sm:$0xff]  }
  0x25   :  { %774 = vmatpush3.bf16.msra.mxu0 %v873_v42 }
  0x26   :  { %411 = vmatpush1.bf16.msra.mxu1 %v836_v15  ;;  %775 = vmatprep.subr.bf16.mxu0 %v874_v43 }
  0x27   :  { %719 = vmatmul.mubr.msk.bf16.gmra.mrb[8].mxu0 %vm87_vm0, %v820_v13  ;;  %412 = vmatprep.subr.bf16.mxu1 %v837_v16 }
  0x28   :  { %162 = vmatprep.mubr.bf16.mxu0 %v913_v0 }
  0x29   :  { %776 = vmatpush3.bf16.msra.mxu0 %v875_v44 }
  0x2a   :  { %413 = vmatpush1.bf16.msra.mxu1 %v839_v17  ;;  %777 = vmatprep.subr.bf16.mxu0 %v876_v45 }
  0x2b   :  { %414 = vmatprep.subr.bf16.mxu1 %v840_v19 }
  0x2d   :  { %778 = vmatpush3.bf16.msra.mxu0 %v877_v46 }
  0x2e   :  { %415 = vmatpush1.bf16.msra.mxu1 %v842_v20  ;;  %779 = vmatprep.subr.bf16.mxu0 %v878_v47 }
  0x2f   :  { %720 = vmatmul.mubr.msk.bf16.gmra.mrb[12].mxu0 %vm87_vm0, %v821_v18  ;;  %416 = vmatprep.subr.bf16.mxu1 %v843_v21 }
  0x31   :  { %780 = vmatpush3.bf16.msra.mxu0 %v879_v48 }
  0x32   :  { %417 = vmatpush1.bf16.msra.mxu1 %v845_v22  ;;  %781 = vmatprep.subr.bf16.mxu0 %v880_v49 }
  0x33   :  { %418 = vmatprep.subr.bf16.mxu1 %v846_v23 }
  0x35   :  { %782 = vmatpush3.bf16.msra.mxu0 %v881_v50  ;;  %v882_v50 = vld [vmem:[%s1082_s3 + $0x70] sm:$0xff]  }
  0x36   :  { %419 = vmatpush1.bf16.msra.mxu1 %v848_v24  ;;  %783 = vmatprep.subr.bf16.mxu0 %v882_v50  ;;  %v754_v50 = vld [vmem:[%s1083_s4 + $0x2] ss:$0 sm:$0xff] }
  0x37   :  { %420 = vmatprep.subr.bf16.mxu1 %v849_v25 }
  0x39   :  { %784 = vmatpush3.bf16.msra.mxu0 %v883_v51 }
  0x3a   :  { %421 = vmatpush1.bf16.msra.mxu1 %v851_v26  ;;  %785 = vmatprep.subr.bf16.mxu0 %v884_v54 }
  0x3b   :  { %422 = vmatprep.subr.bf16.mxu1 %v852_v27 }
  0x3e   :  { %423 = vmatpush1.bf16.msra.mxu1 %v854_v28 }
  0x3f   :  { %424 = vmatprep.subr.bf16.mxu1 %v855_v29 }
  0x42   :  { %425 = vmatpush1.bf16.msra.mxu1 %v857_v30 }
  0x43   :  { %426 = vmatprep.subr.bf16.mxu1 %v858_v31 }
  0x46   :  { %427 = vmatpush1.bf16.msra.mxu1 %v860_v32 }
  0x47   :  { %428 = vmatprep.subr.bf16.mxu1 %v861_v33 }
  0x4a   :  { %429 = vmatpush1.bf16.msra.mxu1 %v863_v34 }
  0x4b   :  { %430 = vmatprep.subr.bf16.mxu1 %v864_v35 }
  0x4e   :  { %431 = vmatpush1.bf16.msra.mxu1 %v866_v36 }
  0x4f   :  { %432 = vmatprep.subr.bf16.mxu1 %v867_v37 }
  0x52   :  { %433 = vmatpush1.bf16.msra.mxu1 %v869_v38 }
  0xea   :  { %v134_v58 = vpop.f32.mrb[0].mxu0 }
  0xeb   :  { %v135_v59 = vadd.f32 %v134_v58, %v50_v56  ;;  %v136_v60 = vpop.f32.mrb[1].mxu0 }
  0xec   :  { %v137_v61 = vadd.f32 %v136_v60, %v54_v57  ;;  %v138_v62 = vpop.f32.mrb[2].mxu0 }
  0xed   :  { %v139_v63 = vadd.f32 %v138_v62, %v50_v56  ;;  %v140_v0 = vpop.f32.mrb[3].mxu0  ;;  %v173_v2 = vmax.f32 %v135_v59, 0.0 }
  0xee   :  { %v141_v1 = vadd.f32 %v140_v0, %v54_v57  ;;  %v174_v4 = vmax.f32 %v137_v61, 0.0 }
  0xef   :  { %v175_v3 = vmax.f32 %v139_v63, 0.0 }
  0xf0   :  { %v176_v5 = vmax.f32 %v141_v1, 0.0 }
  0xf1   :  { %v189_v6 = vpack.c.bf16 %v175_v3, %v173_v2 }
  0xf2   :  { %v144_v7 = vpop.f32.mrb[4].mxu0  ;;  %v190_v8 = vpack.c.bf16 %v176_v5, %v174_v4 }
  0xf3   :  { %v145_v9 = vadd.f32 %v144_v7, %v50_v56  ;;  %v146_v10 = vpop.f32.mrb[5].mxu0 }
  0xf4   :  { %v147_v11 = vadd.f32 %v146_v10, %v54_v57  ;;  %v148_v12 = vpop.f32.mrb[6].mxu0  ;;  %434 = vmatprep.mubr.bf16.mxu1 %v190_v8 }
  0xf5   :  { %v149_v13 = vadd.f32 %v148_v12, %v50_v56  ;;  %v150_v14 = vpop.f32.mrb[7].mxu0  ;;  %435 = vmatmul.mubr.bf16.vlgmr.msra.gmra.mrb[0].mxu1 %v189_v6  ;;  %v177_v16 = vmax.f32 %v145_v9, 0.0 }
  0xf6   :  { %v151_v15 = vadd.f32 %v150_v14, %v54_v57  ;;  %v178_v18 = vmax.f32 %v147_v11, 0.0 }
  0xf7   :  { %v179_v17 = vmax.f32 %v149_v13, 0.0 }
  0xf8   :  { %v180_v19 = vmax.f32 %v151_v15, 0.0 }
  0xf9   :  { %v191_v20 = vpack.c.bf16 %v179_v17, %v177_v16 }
  0xfa   :  { %v192_v21 = vpack.c.bf16 %v180_v19, %v178_v18  ;;  %v154_v22 = vpop.f32.mrb[8].mxu0 }
  0xfb   :  { %v155_v23 = vadd.f32 %v154_v22, %v50_v56  ;;  %v156_v24 = vpop.f32.mrb[9].mxu0 }
  0xfc   :  { %v157_v25 = vadd.f32 %v156_v24, %v54_v57  ;;  %v158_v26 = vpop.f32.mrb[10].mxu0  ;;  %444 = vmatprep.mubr.bf16.mxu1 %v192_v21 }
  0xfd   :  { %v159_v27 = vadd.f32 %v158_v26, %v50_v56  ;;  %v160_v28 = vpop.f32.mrb[11].mxu0  ;;  %445 = vmatmul.mubr.bf16.gmra.mrb[4].mxu1 %v191_v20  ;;  %v181_v30 = vmax.f32 %v155_v23, 0.0 }
  0xfe   :  { %v161_v29 = vadd.f32 %v160_v28, %v54_v57  ;;  %v182_v32 = vmax.f32 %v157_v25, 0.0 }
  0xff   :  { %v183_v31 = vmax.f32 %v159_v27, 0.0 }
 0x100   :  { %v184_v33 = vmax.f32 %v161_v29, 0.0 }
 0x101   :  { %v193_v34 = vpack.c.bf16 %v183_v31, %v181_v30 }
 0x102   :  { %v194_v35 = vpack.c.bf16 %v184_v33, %v182_v32  ;;  %v164_v36 = vpop.f32.mrb[12].mxu0 }
 0x103   :  { %v165_v37 = vadd.f32 %v164_v36, %v50_v56  ;;  %v166_v38 = vpop.f32.mrb[13].mxu0 }
 0x104   :  { %v167_v39 = vadd.f32 %v166_v38, %v54_v57  ;;  %v168_v40 = vpop.f32.mrb[14].mxu0  ;;  %454 = vmatprep.mubr.bf16.mxu1 %v194_v35 }
 0x105   :  { %v169_v41 = vadd.f32 %v168_v40, %v50_v56  ;;  %v170_v42 = vpop.f32.mrb[15].mxu0  ;;  %455 = vmatmul.mubr.bf16.gmra.mrb[8].mxu1 %v193_v34  ;;  %v185_v44 = vmax.f32 %v165_v37, 0.0  ;;  %v885_v56 = vld [vmem:[%s1082_s3 + $0x38] sm:$0xff]  }
 0x106   :  { %v171_v43 = vadd.f32 %v170_v42, %v54_v57  ;;  %v186_v46 = vmax.f32 %v167_v39, 0.0  ;;  %786 = vmatpush3.bf16.msra.mxu0 %v885_v56  ;;  %v721_v57 = vld [vmem:[%s1083_s4 + $0x1] ss:$4 sm:$0x3] }
 0x107   :  { %v187_v45 = vmax.f32 %v169_v41, 0.0  ;;  %v235_v58 = vrot.slane %v721_v57, %v49_v53  ;;  %v239_v59 = vrot.slane %v721_v57, %v53_v55 }
 0x108   :  { %v188_v47 = vmax.f32 %v171_v43, 0.0 }
 0x109   :  { %v195_v48 = vpack.c.bf16 %v187_v45, %v185_v44 }
 0x10a   :  { %v196_v49 = vpack.c.bf16 %v188_v47, %v186_v46 }
 0x10c   :  { %464 = vmatprep.mubr.bf16.mxu1 %v196_v49 }
 0x10d   :  { %465 = vmatmul.mubr.bf16.gmra.mrb[12].mxu1 %v195_v48 }
 0x1c8   :  { %v436_v60 = vpop.f32.mrb[0].mxu1 }
 0x1c9   :  { %v437_v61 = vadd.f32 %v436_v60, %v235_v58  ;;  %v438_v62 = vpop.f32.mrb[1].mxu1 }
 0x1ca   :  { %v439_v63 = vadd.f32 %v438_v62, %v239_v59  ;;  %v440_v0 = vpop.f32.mrb[2].mxu1 }
 0x1cb   :  { %v441_v1 = vadd.f32 %v440_v0, %v235_v58  ;;  %v442_v2 = vpop.f32.mrb[3].mxu1  ;;  %v475_v4 = vmax.f32 %v437_v61, 0.0 }
 0x1cc   :  { %v443_v3 = vadd.f32 %v442_v2, %v239_v59  ;;  %v476_v6 = vmax.f32 %v439_v63, 0.0 }
 0x1cd   :  { %v477_v5 = vmax.f32 %v441_v1, 0.0 }
 0x1ce   :  { %v478_v7 = vmax.f32 %v443_v3, 0.0 }
 0x1cf   :  { %v491_v8 = vpack.c.bf16 %v477_v5, %v475_v4 }
 0x1d0   :  { %v492_v9 = vpack.c.bf16 %v478_v7, %v476_v6  ;;  %v446_v10 = vpop.f32.mrb[4].mxu1 }
 0x1d1   :  { %v447_v11 = vadd.f32 %v446_v10, %v235_v58  ;;  %v448_v53 = vpop.f32.mrb[5].mxu1 }
 0x1d2   :  { %v449_v12 = vadd.f32 %v448_v53, %v239_v59  ;;  %v450_v52 = vpop.f32.mrb[6].mxu1  ;;  %664 = vmatprep.mubr.bf16.mxu0 %v492_v9 }
 0x1d3   :  { %v451_v55 = vadd.f32 %v450_v52, %v235_v58  ;;  %v452_v13 = vpop.f32.mrb[7].mxu1  ;;  %665 = vmatmul.mubr.bf16.vlgmr.msra.gmra.mrb[16].mxu0 %v491_v8  ;;  %v479_v15 = vmax.f32 %v447_v11, 0.0 }
 0x1d4   :  { %v453_v14 = vadd.f32 %v452_v13, %v239_v59  ;;  %v480_v17 = vmax.f32 %v449_v12, 0.0 }
 0x1d5   :  { %v481_v16 = vmax.f32 %v451_v55, 0.0 }
 0x1d6   :  { %v482_v18 = vmax.f32 %v453_v14, 0.0 }
 0x1d7   :  { %v493_v19 = vpack.c.bf16 %v481_v16, %v479_v15 }
 0x1d8   :  { %v494_v20 = vpack.c.bf16 %v482_v18, %v480_v17  ;;  %v456_v21 = vpop.f32.mrb[8].mxu1 }
 0x1d9   :  { %v457_v22 = vadd.f32 %v456_v21, %v235_v58  ;;  %v458_v23 = vpop.f32.mrb[9].mxu1 }
 0x1da   :  { %v459_v24 = vadd.f32 %v458_v23, %v239_v59  ;;  %v460_v25 = vpop.f32.mrb[10].mxu1  ;;  %672 = vmatprep.mubr.bf16.mxu0 %v494_v20 }
 0x1db   :  { %v461_v26 = vadd.f32 %v460_v25, %v235_v58  ;;  %v462_v27 = vpop.f32.mrb[11].mxu1  ;;  %673 = vmatmul.mubr.bf16.gmra.mrb[20].mxu0 %v493_v19  ;;  %v483_v29 = vmax.f32 %v457_v22, 0.0 }
 0x1dc   :  { %v463_v28 = vadd.f32 %v462_v27, %v239_v59  ;;  %v484_v31 = vmax.f32 %v459_v24, 0.0 }
 0x1dd   :  { %v485_v30 = vmax.f32 %v461_v26, 0.0 }
 0x1de   :  { %v486_v32 = vmax.f32 %v463_v28, 0.0 }
 0x1df   :  { %v495_v33 = vpack.c.bf16 %v485_v30, %v483_v29 }
 0x1e0   :  { %v496_v34 = vpack.c.bf16 %v486_v32, %v484_v31  ;;  %v466_v35 = vpop.f32.mrb[12].mxu1 }
 0x1e1   :  { %v467_v36 = vadd.f32 %v466_v35, %v235_v58  ;;  %v468_v37 = vpop.f32.mrb[13].mxu1 }
 0x1e2   :  { %v469_v38 = vadd.f32 %v468_v37, %v239_v59  ;;  %v470_v39 = vpop.f32.mrb[14].mxu1  ;;  %680 = vmatprep.mubr.bf16.mxu0 %v496_v34 }
 0x1e3   :  { %v471_v40 = vadd.f32 %v470_v39, %v235_v58  ;;  %v472_v41 = vpop.f32.mrb[15].mxu1  ;;  %681 = vmatmul.mubr.bf16.gmra.mrb[24].mxu0 %v495_v33  ;;  %v487_v43 = vmax.f32 %v467_v36, 0.0 }
 0x1e4   :  { %v473_v42 = vadd.f32 %v472_v41, %v239_v59  ;;  %v488_v45 = vmax.f32 %v469_v38, 0.0 }
 0x1e5   :  { %v489_v44 = vmax.f32 %v471_v40, 0.0 }
 0x1e6   :  { %v490_v46 = vmax.f32 %v473_v42, 0.0 }
 0x1e7   :  { %v497_v47 = vpack.c.bf16 %v489_v44, %v487_v43 }
 0x1e8   :  { %v498_v48 = vpack.c.bf16 %v490_v46, %v488_v45 }
 0x1ea   :  { %688 = vmatprep.mubr.bf16.mxu0 %v498_v48 }
 0x1eb   :  { %689 = vmatmul.mubr.bf16.gmra.mrb[28].mxu0 %v497_v47 }
 0x2a6   :  { %v787_v49 = vpop.f32.mrb[16].mxu0 }
 0x2a7   :  { %v788_v51 = vpop.f32.mrb[17].mxu0 }
 0x2a8   :  { %v789_v54 = vadd.f32 %v788_v51, %v787_v49  ;;  %v790_v56 = vpop.f32.mrb[18].mxu0 }
 0x2a9   :  { %v791_v57 = vpop.f32.mrb[19].mxu0 }
 0x2aa   :  { %v667_v58 = vadd.f32 %v789_v54, %v754_v50  ;;  %v792_v59 = vadd.f32 %v791_v57, %v790_v56 }
 0x2ac   :  { %698 = vst.msk [vmem:[%s1084_s5] sm:$0xff] %vm697_vm1, %v667_v58  ;;  %v670_v60 = vadd.f32 %v792_v59, %v754_v50 }
 0x2ae   :  { %699 = vst.msk [vmem:[%s1084_s5 + $0x8] sm:$0xff] %vm697_vm1, %v670_v60  ;;  %v793_v61 = vpop.f32.mrb[20].mxu0 }
 0x2af   :  { %v794_v62 = vpop.f32.mrb[21].mxu0 }
 0x2b0   :  { %v795_v63 = vadd.f32 %v794_v62, %v793_v61  ;;  %v796_v0 = vpop.f32.mrb[22].mxu0 }
 0x2b1   :  { %v797_v1 = vpop.f32.mrb[23].mxu0 }
 0x2b2   :  { %v675_v2 = vadd.f32 %v795_v63, %v754_v50  ;;  %v798_v3 = vadd.f32 %v797_v1, %v796_v0 }
 0x2b4   :  { %700 = vst.msk [vmem:[%s1084_s5 + $0x10] sm:$0xff] %vm697_vm1, %v675_v2  ;;  %v678_v4 = vadd.f32 %v798_v3, %v754_v50 }
 0x2b6   :  { %701 = vst.msk [vmem:[%s1084_s5 + $0x18] sm:$0xff] %vm697_vm1, %v678_v4  ;;  %v799_v5 = vpop.f32.mrb[24].mxu0 }
 0x2b7   :  { %v800_v6 = vpop.f32.mrb[25].mxu0 }
 0x2b8   :  { %v801_v7 = vadd.f32 %v800_v6, %v799_v5  ;;  %v802_v8 = vpop.f32.mrb[26].mxu0 }
 0x2b9   :  { %v803_v9 = vpop.f32.mrb[27].mxu0 }
 0x2ba   :  { %v683_v10 = vadd.f32 %v801_v7, %v754_v50  ;;  %v804_v11 = vadd.f32 %v803_v9, %v802_v8 }
 0x2bc   :  { %702 = vst.msk [vmem:[%s1084_s5 + $0x20] sm:$0xff] %vm697_vm1, %v683_v10  ;;  %v686_v53 = vadd.f32 %v804_v11, %v754_v50 }
 0x2be   :  { %703 = vst.msk [vmem:[%s1084_s5 + $0x28] sm:$0xff] %vm697_vm1, %v686_v53  ;;  %v805_v12 = vpop.f32.mrb[28].mxu0 }
 0x2bf   :  { %v806_v52 = vpop.f32.mrb[29].mxu0 }
 0x2c0   :  { %v807_v55 = vadd.f32 %v806_v52, %v805_v12  ;;  %v808_v13 = vpop.f32.mrb[30].mxu0 }
 0x2c1   :  { %v809_v14 = vpop.f32.mrb[31].mxu0 }
 0x2c2   :  { %v691_v15 = vadd.f32 %v807_v55, %v754_v50  ;;  %v810_v16 = vadd.f32 %v809_v14, %v808_v13 }
 0x2c4   :  { %704 = vst.msk [vmem:[%s1084_s5 + $0x30] sm:$0xff] %vm697_vm1, %v691_v15  ;;  %v694_v17 = vadd.f32 %v810_v16, %v754_v50 }
 0x2c6   :  { %705 = vst.msk [vmem:[%s1084_s5 + $0x38] sm:$0xff] %vm697_vm1, %v694_v17 }
 0x2c7   :  { %710 = vsyncpa [#allocation3], 1 }

</bundles_post_ra>
